<compile_context>
chip_gen: v7x
topology: tpu7x:2x2x1
jax: 0.10.0
libtpu: 0.0.40
codegen_flags: <defaults>
</compile_context>

<pallas_src>
import jax
import jax.numpy as jnp
from jax.experimental import pallas as pl
from jax.experimental.pallas import tpu as pltpu


def _copy_kernel(x_ref, o_ref):
    # straight identity copy of the current VMEM tile
    o_ref[...] = x_ref[...]


def _pick_cols(n: int):
    """Largest lane-dense width (multiple of 128) that divides n, or None."""
    for c in (4096, 2048, 1024, 512, 256, 128):
        if n % c == 0:
            return c
    return None


def _small_copy(a2d: jax.Array) -> jax.Array:
    """Grid-less whole-array copy for tiny / tail slabs (< a few KiB)."""
    return pl.pallas_call(
        _copy_kernel,
        out_shape=jax.ShapeDtypeStruct(a2d.shape, a2d.dtype),
    )(a2d)


def _tiled_copy_2d(x2d: jax.Array) -> jax.Array:
    """Tiled, pipelined HBM->VMEM->HBM copy of a (rows, cols) slab.

    cols is a multiple of 128 (lane-dense, unmasked full-width stores);
    rows are tiled in sublane-quantum multiples so the auto double-buffered
    pipeline overlaps load / store DMAs.
    """
    rows, cols = x2d.shape
    itemsize = x2d.dtype.itemsize
    # Sublane quantum: 8 for 4-byte, 16 for 2-byte, 32 for 1-byte dtypes.
    sub = 8 * max(1, 4 // itemsize)

    # ~2 MiB per buffer: with in+out each double-buffered (~4x) this fits the
    # default scoped VMEM on v5e (16 MiB) and leaves big headroom on v6e/v7x,
    # while being large enough to amortize the ~0.35 us per-step overhead.
    target_tile_bytes = 2 << 20
    tile_r = (target_tile_bytes // (cols * itemsize)) // sub * sub
    tile_r = max(sub, tile_r)
    tile_r = min(tile_r, rows)  # full-extent rows block when rows are small

    grid_r = pl.cdiv(rows, tile_r)
    tile_bytes = tile_r * cols * itemsize
    vmem_limit = int(min(64 << 20, max(16 << 20, 6 * tile_bytes)))

    return pl.pallas_call(
        _copy_kernel,
        out_shape=jax.ShapeDtypeStruct((rows, cols), x2d.dtype),
        grid_spec=pltpu.PrefetchScalarGridSpec(
            num_scalar_prefetch=0,
            grid=(grid_r,),
            in_specs=[pl.BlockSpec((tile_r, cols), lambda i: (i, 0))],
            out_specs=pl.BlockSpec((tile_r, cols), lambda i: (i, 0)),
        ),
        compiler_params=pltpu.CompilerParams(
            # 'parallel' lets v7x shard grid steps across its 2 TensorCores;
            # harmless on single-core v5e/v6e.
            dimension_semantics=("parallel",),
            vmem_limit_bytes=vmem_limit,
        ),
        cost_estimate=pl.CostEstimate(
            flops=0,
            transcendentals=0,
            bytes_accessed=2 * rows * cols * itemsize,
        ),
    )(x2d)


def _copy_flat(flat: jax.Array) -> jax.Array:
    """Identity copy of a flat 1-D buffer through the Pallas kernel(s)."""
    n = flat.shape[0]
    cols = _pick_cols(n)
    if cols is not None:
        return _tiled_copy_2d(flat.reshape(n // cols, cols)).reshape(n)

    # n not a multiple of 128: main lane-dense slab through the tiled kernel,
    # tiny (<128 element) tail through a grid-less copy, then stitch.
    n_main = (n // 128) * 128
    if n_main == 0:
        return _small_copy(flat.reshape(1, n)).reshape(n)
    cols_m = _pick_cols(n_main)
    main = _tiled_copy_2d(flat[:n_main].reshape(n_main // cols_m, cols_m))
    tail = _small_copy(flat[n_main:].reshape(1, n - n_main))
    return jnp.concatenate([main.reshape(n_main), tail.reshape(n - n_main)])


def squeeze_pallas(x: jax.Array) -> jax.Array:
    """Equivalent of torch.Tensor.squeeze(): drop every size-1 dimension."""
    out_shape = tuple(d for d in x.shape if d != 1)
    n = x.size
    if n == 0:
        # Empty tensor: nothing to copy, metadata-only reshape.
        return x.reshape(out_shape)
    flat = x.reshape(n)
    out_flat = _copy_flat(flat)
    return out_flat.reshape(out_shape)


if __name__ == "__main__":
    key = jax.random.PRNGKey(0)
    k1, k2, k3 = jax.random.split(key, 3)

    # Primary small NCHW input with a size-1 channel dim (spec-shaped test).
    x1 = jax.random.normal(k1, (2, 1, 16, 16), dtype=jnp.float32)
    y1 = squeeze_pallas(x1)
    jax.block_until_ready(y1)
    r1 = jnp.squeeze(x1)
    assert y1.shape == r1.shape == (2, 16, 16), y1.shape
    assert jnp.array_equal(y1, r1), "mismatch vs reference squeeze (x1)"

    # Moderate input that exercises the multi-step tiled / pipelined path.
    x2 = jax.random.normal(k2, (2, 1, 1024, 512), dtype=jnp.float32)
    y2 = squeeze_pallas(x2)
    jax.block_until_ready(y2)
    r2 = jnp.squeeze(x2)
    assert y2.shape == r2.shape == (2, 1024, 512), y2.shape
    assert jnp.array_equal(y2, r2), "mismatch vs reference squeeze (x2)"

    # Odd element count (n % 128 != 0) exercising the main + tail fallback.
    x3 = jax.random.normal(k3, (1, 5, 1, 7, 9), dtype=jnp.float32)
    y3 = squeeze_pallas(x3)
    jax.block_until_ready(y3)
    r3 = jnp.squeeze(x3)
    assert y3.shape == r3.shape == (5, 7, 9), y3.shape
    assert jnp.array_equal(y3, r3), "mismatch vs reference squeeze (x3)"

    # All-ones shape squeezes to a 0-d scalar (torch semantics).
    x4 = jnp.ones((1, 1, 1), dtype=jnp.float32)
    y4 = squeeze_pallas(x4)
    jax.block_until_ready(y4)
    assert y4.shape == ()
    assert jnp.array_equal(y4, jnp.squeeze(x4)), "mismatch vs reference (x4)"

    print("KERNEL_OK")
</pallas_src>

<mosaic_0001>
module attributes {stable_mosaic.version = 11 : i64} {
  func.func @_copy_kernel(%arg0: i32, %arg1: memref<1x512xf32, #tpu.memory_space<vmem>>, %arg2: memref<1x512xf32, #tpu.memory_space<vmem>>) attributes {dimension_semantics = [#tpu.dimension_semantics<parallel>], iteration_bounds = array<i64: 1>, scalar_prefetch = 0 : i64, scratch_operands = 0 : i64, tpu.core_type = #tpu.core_type<tc>, window_params = [{transform_indices = @transform_0, window_bounds = array<i64: 1, 512>}, {transform_indices = @transform_1, window_bounds = array<i64: 1, 512>}]} {
    %c0 = arith.constant 0 : index
    %c0_0 = arith.constant 0 : index
    %0 = vector.load %arg1[%c0, %c0_0] : memref<1x512xf32, #tpu.memory_space<vmem>>, vector<1x512xf32>
    %c0_1 = arith.constant 0 : index
    %c0_2 = arith.constant 0 : index
    %1 = vector.load %arg2[%c0_1, %c0_2] : memref<1x512xf32, #tpu.memory_space<vmem>>, vector<1x512xf32>
    tpu.vector_store %arg2[%c0_1, %c0_2], %0 {strides = array<i32>} : memref<1x512xf32, #tpu.memory_space<vmem>>, vector<1x512xf32>,
    return
  }
  func.func @transform_0(%arg0: i32) -> (i32, i32) {
    %c0_i32 = arith.constant 0 : i32
    %c0_i32_0 = arith.constant 0 : i32
    return %arg0, %c0_i32 : i32, i32
  }
  func.func @transform_1(%arg0: i32) -> (i32, i32) {
    %c0_i32 = arith.constant 0 : i32
    %c0_i32_0 = arith.constant 0 : i32
    return %arg0, %c0_i32 : i32, i32
  }
}

</mosaic_0001>

<bundles_post_ra>
// kernel: tpu_custom_call.1
= control target key start
LH: loop header
LB: loop body
LE: loop exit
PB: predicated region body
PF: predicated region fallthrough
CT: control target
= control target key end

     0   :  { %6 = vsyncpa [#allocation3], 0  ;;  %s128_s0 = inlined_call_operand.hbm [shape: f32[1,512], index: 0, kind: input, shape index: {}]   ;;  %s129_s1 = inlined_call_operand.hbm [shape: f32[1,512], index: 1, kind: output, shape index: {}]  }
   0x1   :  { %7 = vsyncpa [#allocation4], 0  ;;  %s92_s6 = smov [#allocation2]   ;;  %s44_s10 = scalar_lea.hbm %s128_s0, 64 }
   0x2   :  { %s14_s7 = sshll.u32 %s92_s6, 4  ;;  %p45_p0 = scmp.ne.s32.totalorder %s128_s0, %s44_s10  ;;  %s15_s7 = int_to_ptr.vmem [resolvable:$true] %s14_s7 }
   0x3   :  { %p48_p1 = scmp.lt.u32.totalorder %s44_s10, %s128_s0 }
   0x5   :  { %p50_p2 = pnand %p48_p1, %p45_p0 }
   0x7   :  { %53 = shalt.err (!%p50_p2)
}
   0x8   :  { %s54_s15 = scalar_lea.vmem %s15_s7, 64  ;;  %p59_p4 = scmp.lt.s32.totalorder %s15_s7, %s15_s7 }
   0x9   :  { %p55_p3 = scmp.ne.s32.totalorder %s15_s7, %s54_s15  ;;  %p60_p5 = scmp.lt.s32.totalorder %s54_s15, %s54_s15 }
   0xb   :  { %p61_p6 = por %p60_p5, %p59_p4 }
   0xd   :  { %p62_p7 = pnand %p61_p6, %p55_p3 }
   0xf   :  { %65 = shalt.err (!%p62_p7)
}
  0x10   :  { %17 = dma.hbm_to_vmem [thread:$0]  %s128_s0, 64, %s15_s7, [#allocation3]  }
  0x11   :  { %88 = dma.done.wait [#allocation3], 64  }
  0x12   :  { %89 = vsyncadd [#allocation3], 4294967232  ;;  %v22_v0 = vlaneseq  ;;  %s93_s18 = smov [#allocation5]   ;;  %v21_v1 = vld [vmem:[#allocation2] sm:$0xf] }
  0x13   :  { %s33_s19 = sshll.u32 %s93_s18, 4  ;;  %s34_s19 = int_to_ptr.vmem [resolvable:$true] %s33_s19 }
  0x14   :  { %vm24_vm0 = vcmp.lt.s32.totalorder %v22_v0, 512  ;;  %s66_s20 = scalar_lea.vmem %s34_s19, 64  ;;  %p71_p9 = scmp.lt.s32.totalorder %s34_s19, %s34_s19 }
  0x15   :  { %26 = vst.msk [vmem:[#allocation5] sm:$0xf] %vm24_vm0, %v21_v1  ;;  %p67_p8 = scmp.ne.s32.totalorder %s34_s19, %s66_s20  ;;  %p72_p10 = scmp.lt.s32.totalorder %s66_s20, %s66_s20 }
  0x17   :  { %p73_p11 = por %p72_p10, %p71_p9 }
  0x19   :  { %p74_p12 = pnand %p73_p11, %p67_p8 }
  0x1b   :  { %77 = shalt.err (!%p74_p12)
}
  0x1c   :  { %s78_s0 = scalar_lea.hbm %s129_s1, 64 }
  0x1d   :  { %p79_p13 = scmp.ne.s32.totalorder %s129_s1, %s78_s0  ;;  %p82_p0 = scmp.lt.u32.totalorder %s78_s0, %s129_s1 }
  0x1f   :  { %p84_p1 = pnand %p82_p0, %p79_p13 }
  0x21   :  { %87 = shalt.err (!%p84_p1)
}
  0x22   :  { %36 = dma.vmem_to_hbm [thread:$0]  %s34_s19, 64, %s129_s1, [#allocation4]  }
  0x23   :  { %90 = dma.done.wait [#allocation4], 64  }
  0x24   :  { %91 = vsyncadd [#allocation4], 4294967232 }
  0x25   :  { %40 = vsyncpa [#allocation3], 1 }
  0x26   :  { %41 = vsyncpa [#allocation4], 1 }

</bundles_post_ra>
